<compile_context>
chip_gen: v6e
topology: v6e:2x2x1
jax: 0.10.0
libtpu: 0.0.40
codegen_flags: <defaults>
</compile_context>

<pallas_src>
import functools
import itertools

import numpy as np
import jax
import jax.numpy as jnp
from jax import lax
from jax.experimental import pallas as pl
from jax.experimental.pallas import tpu as pltpu

ENTITY_PADDING = (-1, -1, -1)


def _round_up(x, m):
    return ((x + m - 1) // m) * m


# ----------------------------------------------------------------------------
# Pallas kernel: f32 softmax + three accumulating MXU dots against the
# precomputed weighted one-hot matrices.
#   out = softmax(logits) @ Wc + pos_start @ Ws + pos_end @ We
# ----------------------------------------------------------------------------
def _matcher_cost_kernel(logits_ref, pos_s_ref, pos_e_ref,
                         w_cls_ref, w_start_ref, w_end_ref, out_ref):
    # logits_ref : (tm, C)     pos_*_ref : (tm, S)
    # w_cls_ref  : (C, NPAD)   w_start/end_ref : (S, NPAD)  (grid-invariant,
    #              nonzeros already carry -cost_class / -cost_pos)
    # out_ref    : (tm, NPAD) f32
    logits = logits_ref[...]
    m = jnp.max(logits, axis=-1, keepdims=True)
    e = jnp.exp(logits - m)
    # exact reciprocal: keeps cost values bit-stable enough that assignment
    # ties are not flipped vs. an f32 reference
    prob = e * pl.reciprocal(jnp.sum(e, axis=-1, keepdims=True), approx=False)

    acc = jnp.dot(prob, w_cls_ref[...], preferred_element_type=jnp.float32)
    acc = acc + jnp.dot(pos_s_ref[...], w_start_ref[...],
                        preferred_element_type=jnp.float32)
    acc = acc + jnp.dot(pos_e_ref[...], w_end_ref[...],
                        preferred_element_type=jnp.float32)
    out_ref[...] = acc


# ----------------------------------------------------------------------------
# Tile planning (VMEM-capacity aware, >= 2 parallel M-tiles when possible)
# ----------------------------------------------------------------------------
def _tile_plan(M, C, S, npad):
    K = C + 2 * S
    try:
        vmem_bytes = int(pltpu.get_tpu_info().vmem_capacity_bytes)
    except Exception:
        vmem_bytes = 64 << 20            # conservative fallback (v7x per-TC)
    budget = (3 * vmem_bytes) // 4       # leave headroom for compiler scratch

    per_row = 8 * K + 8 * npad           # f32: double-buffered inputs + output
    invariant = K * npad * 4             # grid-invariant weight matrices
    tm_cap = max(8, (budget - invariant) // per_row)
    tm_cap = min((tm_cap // 8) * 8, 2048)

    m_pad = _round_up(M, 8)
    if m_pad >= 16:
        # force >= 2 grid steps so the "parallel" M axis shards across the
        # two TensorCores on v7x (and megacore on v5e/v6e)
        tm_cap = min(tm_cap, _round_up((m_pad + 1) // 2, 8))
    tm = tm_cap
    t, lo = tm_cap, max(8, tm_cap // 2)
    while t >= lo:                       # prefer a tm that divides m_pad
        if m_pad % t == 0:               # (skips the padded-copy path below)
            tm = t
            break
        t -= 8
    m_pad = _round_up(m_pad, tm)

    # explicit scoped-VMEM limit: v5e default is 16 MiB, v6e/v7x 32 MiB, which
    # large double-buffered tiles would trip.
    need = 2 * tm * K * 4 + 2 * tm * npad * 4 + 2 * invariant + (4 << 20)
    vmem_limit = int(min(budget, max(need, 16 << 20)))
    return tm, m_pad, vmem_limit


def _one_hot_weight(idx, depth, weight):
    # idx: (NPAD,) int32, -1 for padded columns (never matches -> 0 weight)
    iota = lax.broadcasted_iota(jnp.int32, (depth, idx.shape[0]), 0)
    return jnp.where(iota == idx[None, :], weight,
                     jnp.float32(0.0)).astype(jnp.float32)


@functools.partial(jax.jit, static_argnames=("tm", "m_pad", "vmem_limit"))
def _cost_matrix_device(pred_logits, pos_start, pos_end,
                        cls_idx, start_idx, end_idx, neg_w,
                        tm, m_pad, vmem_limit):
    """(nq,bs,C) logits + (bs,nq,S) positions -> (M, NPAD) cost matrix."""
    nq, bs, C = pred_logits.shape
    S = pos_start.shape[-1]
    M = bs * nq
    npad = cls_idx.shape[-1]

    # device-side layout change (mirrors transpose(1,0).flatten(0,1))
    logits_flat = jnp.swapaxes(pred_logits, 0, 1).reshape(M, C)
    pos_s_flat = pos_start.reshape(M, S)
    pos_e_flat = pos_end.reshape(M, S)
    if m_pad != M:                       # normally skipped (tm divides M)
        pad = ((0, m_pad - M), (0, 0))
        logits_flat = jnp.pad(logits_flat, pad)
        pos_s_flat = jnp.pad(pos_s_flat, pad)
        pos_e_flat = jnp.pad(pos_e_flat, pad)

    # weighted one-hot gather matrices, built once per call (tiny)
    w_cls = _one_hot_weight(cls_idx, C, neg_w[0])
    w_start = _one_hot_weight(start_idx, S, neg_w[1])
    w_end = _one_hot_weight(end_idx, S, neg_w[1])

    out = pl.pallas_call(
        _matcher_cost_kernel,
        out_shape=jax.ShapeDtypeStruct((m_pad, npad), jnp.float32),
        grid_spec=pltpu.PrefetchScalarGridSpec(
            num_scalar_prefetch=0,
            grid=(m_pad // tm,),
            in_specs=[
                pl.BlockSpec((tm, C), lambda i: (i, 0)),
                pl.BlockSpec((tm, S), lambda i: (i, 0)),
                pl.BlockSpec((tm, S), lambda i: (i, 0)),
                # grid-invariant weighted one-hot matrices
                pl.BlockSpec((C, npad), lambda i: (0, 0)),
                pl.BlockSpec((S, npad), lambda i: (0, 0)),
                pl.BlockSpec((S, npad), lambda i: (0, 0)),
            ],
            out_specs=pl.BlockSpec((tm, npad), lambda i: (i, 0)),
        ),
        compiler_params=pltpu.CompilerParams(
            dimension_semantics=("parallel",),
            vmem_limit_bytes=vmem_limit),
    )(logits_flat, pos_s_flat, pos_e_flat, w_cls, w_start, w_end)
    # row slice on device (M is static); column slice to n_total stays on host
    return out[:M]


# ----------------------------------------------------------------------------
# Host-side assignment (no Pallas equivalent for the Hungarian algorithm)
# ----------------------------------------------------------------------------
def _linear_sum_assignment_small(cost):
    nr, nc = cost.shape
    if nc == 0:
        return np.zeros((0,), np.int64), np.zeros((0,), np.int64)
    assert nr >= nc, "demo assignment assumes num_queries >= num_targets"
    best_sum, best_rows = None, None
    for rows in itertools.permutations(range(nr), nc):
        s = float(cost[list(rows), list(range(nc))].sum())
        if best_sum is None or s < best_sum:
            best_sum, best_rows = s, rows
    ri = np.asarray(best_rows, dtype=np.int64)
    ci = np.arange(nc, dtype=np.int64)
    order = np.argsort(ri)
    return ri[order], ci[order]


# ----------------------------------------------------------------------------
# HungarianMatcher (forward) wrapper
# ----------------------------------------------------------------------------
def hungarian_matcher_forward(outputs_dict, targets_dict,
                              cost_class=1.0, cost_pos=1.0,
                              pos_type="separate", debug_check=False):
    assert pos_type == "separate", "only pos_type='separate' is implemented"
    outputs = outputs_dict["pred_entity"]
    pred_logits = jnp.asarray(outputs["pred_logits"], jnp.float32)   # (nq, bs, C)
    pos_start = jnp.asarray(outputs["pred_pos"][0], jnp.float32)     # (bs, nq, S)
    pos_end = jnp.asarray(outputs["pred_pos"][1], jnp.float32)       # (bs, nq, S)

    nq, bs, C = pred_logits.shape
    S = pos_start.shape[-1]
    M = bs * nq

    # --- parse ragged targets on host (mirrors the PyTorch loop) -------------
    ents = np.asarray(targets_dict["entities"])                      # (bs, max_ent, 3)
    per_batch = []
    for b in range(bs):
        spans = []
        for span in ents[b]:
            if tuple(int(x) for x in span) == ENTITY_PADDING:
                break
            spans.append([int(x) for x in span])
        per_batch.append(np.asarray(spans, np.int64).reshape(-1, 3))
    sizes = [len(v) for v in per_batch]
    n_total = int(sum(sizes))
    npad = max(128, _round_up(n_total, 128))                         # lane-dense

    # Reference-module semantics: class id read from span[2] (same as end pos).
    if n_total:
        tgt_ids = np.concatenate([v[:, 2] for v in per_batch])
        tgt_pos_start = np.concatenate([v[:, 1] for v in per_batch])
        tgt_pos_end = np.concatenate([v[:, 2] for v in per_batch])
    else:
        tgt_ids = tgt_pos_start = tgt_pos_end = np.zeros((0,), np.int64)

    def pack(vals):
        a = np.full((npad,), -1, np.int32)
        if n_total:
            a[:n_total] = vals
        return jnp.asarray(a)

    cls_idx = pack(tgt_ids)
    start_idx = pack(tgt_pos_start)
    end_idx = pack(tgt_pos_end)
    # cost weights as data (no recompile when they change)
    neg_w = jnp.asarray([-float(cost_class), -float(cost_pos)], jnp.float32)

    # --- device: fused cost-matrix kernel -------------------------------------
    tm, m_pad, vmem_limit = _tile_plan(M, C, S, npad)
    cost = _cost_matrix_device(pred_logits, pos_start, pos_end,
                               cls_idx, start_idx, end_idx, neg_w,
                               tm=tm, m_pad=m_pad, vmem_limit=vmem_limit)

    # single host sync: the assignment itself runs on host
    cost_np = np.asarray(jax.block_until_ready(cost))[:, :n_total]   # (M, n_total)

    # --- optional correctness check -------------------------------------------
    if debug_check and n_total:
        lg = np.asarray(jnp.swapaxes(pred_logits, 0, 1)).reshape(M, C).astype(np.float64)
        p = np.exp(lg - lg.max(-1, keepdims=True))
        p /= p.sum(-1, keepdims=True)
        ps = np.asarray(pos_start).reshape(M, S)
        pe = np.asarray(pos_end).reshape(M, S)
        ref = (float(cost_class) * (-p[:, tgt_ids])
               + float(cost_pos) * (-ps[:, tgt_pos_start] - pe[:, tgt_pos_end]))
        np.testing.assert_allclose(cost_np, ref, rtol=1e-4, atol=1e-4)

    # --- per-batch split + assignment -----------------------------------------
    cost_bqn = cost_np.reshape(bs, nq, n_total)
    indices = []
    offset = 0
    for b in range(bs):
        sub = cost_bqn[b, :, offset:offset + sizes[b]]
        ri, ci = _linear_sum_assignment_small(sub)
        indices.append((ri, ci))
        offset += sizes[b]
    return {"entity": indices}


# ----------------------------------------------------------------------------
if __name__ == "__main__":
    key = jax.random.PRNGKey(0)
    bs, nq, C, S, max_ent = 2, 8, 16, 16, 4

    k1, k2, k3 = jax.random.split(key, 3)
    pred_logits = jax.random.normal(k1, (nq, bs, C), jnp.float32)
    pred_pos_start = jax.random.normal(k2, (bs, nq, S), jnp.float32)
    pred_pos_end = jax.random.normal(k3, (bs, nq, S), jnp.float32)

    # entities: span layout follows the reference module's indexing
    # (span[1] = start, span[2] = end, class id also read from span[2]).
    entities = np.full((bs, max_ent, 3), -1, dtype=np.int32)
    entities[0, 0] = [0, 2, 5]
    entities[0, 1] = [0, 7, 9]
    entities[0, 2] = [0, 1, 3]
    entities[1, 0] = [0, 4, 6]
    entities[1, 1] = [0, 10, 12]

    outputs_dict = {"pred_entity": {"pred_logits": pred_logits,
                                    "pred_pos": (pred_pos_start, pred_pos_end)}}
    targets_dict = {"entities": entities}

    result = hungarian_matcher_forward(outputs_dict, targets_dict,
                                       cost_class=1.0, cost_pos=1.0,
                                       debug_check=True)

    # sanity: per-batch match counts == min(num_queries, num_targets)
    assert len(result["entity"][0][0]) == 3
    assert len(result["entity"][1][0]) == 2
    print("KERNEL_OK")
</pallas_src>

<mosaic_0001>
module attributes {stable_mosaic.version = 11 : i64} {
  func.func @_matcher_cost_kernel(%arg0: i32, %arg1: memref<8x16xf32, #tpu.memory_space<vmem>>, %arg2: memref<8x16xf32, #tpu.memory_space<vmem>>, %arg3: memref<8x16xf32, #tpu.memory_space<vmem>>, %arg4: memref<16x128xf32, #tpu.memory_space<vmem>>, %arg5: memref<16x128xf32, #tpu.memory_space<vmem>>, %arg6: memref<16x128xf32, #tpu.memory_space<vmem>>, %arg7: memref<8x128xf32, #tpu.memory_space<vmem>>) attributes {dimension_semantics = [#tpu.dimension_semantics<parallel>], iteration_bounds = array<i64: 2>, scalar_prefetch = 0 : i64, scratch_operands = 0 : i64, tpu.core_type = #tpu.core_type<tc>, window_params = [{transform_indices = @transform_0, window_bounds = array<i64: 8, 16>}, {transform_indices = @transform_1, window_bounds = array<i64: 8, 16>}, {transform_indices = @transform_2, window_bounds = array<i64: 8, 16>}, {pipeline_mode = #tpu.pipeline_mode<synchronous>, transform_indices = @transform_3, window_bounds = array<i64: 16, 128>}, {pipeline_mode = #tpu.pipeline_mode<synchronous>, transform_indices = @transform_4, window_bounds = array<i64: 16, 128>}, {pipeline_mode = #tpu.pipeline_mode<synchronous>, transform_indices = @transform_5, window_bounds = array<i64: 16, 128>}, {transform_indices = @transform_6, window_bounds = array<i64: 8, 128>}]} {
    %c0 = arith.constant 0 : index
    %c0_0 = arith.constant 0 : index
    %0 = vector.load %arg1[%c0, %c0_0] : memref<8x16xf32, #tpu.memory_space<vmem>>, vector<8x16xf32>
    %cst = arith.constant dense<0xFF800000> : vector<8xf32>
    %1 = vector.multi_reduction <maximumf>, %0, %cst [1] : vector<8x16xf32> to vector<8xf32>
    %2 = vector.shape_cast %1 : vector<8xf32> to vector<8x1xf32>
    %3 = vector.broadcast %2 : vector<8x1xf32> to vector<8x16xf32>
    %4 = arith.subf %0, %3 : vector<8x16xf32>
    %5 = math.exp %4 : vector<8x16xf32>
    %cst_1 = arith.constant dense<0.000000e+00> : vector<8xf32>
    %6 = vector.multi_reduction <add>, %5, %cst_1 [1] : vector<8x16xf32> to vector<8xf32>
    %7 = vector.shape_cast %6 : vector<8xf32> to vector<8x1xf32>
    %8 = tpu.reciprocal %7 : vector<8x1xf32> -> vector<8x1xf32>
    %9 = vector.broadcast %8 : vector<8x1xf32> to vector<8x16xf32>
    %10 = arith.mulf %5, %9 : vector<8x16xf32>
    %c0_2 = arith.constant 0 : index
    %c0_3 = arith.constant 0 : index
    %11 = vector.load %arg4[%c0_2, %c0_3] : memref<16x128xf32, #tpu.memory_space<vmem>>, vector<16x128xf32>
    %cst_4 = arith.constant dense<0.000000e+00> : vector<8x128xf32>
    %12 = tpu.matmul %10, %11, %cst_4 {dimension_numbers = #tpu.dot_dimension_numbers<[1], [0], [0], [1], [0, 0, 1, 1], [], []>} : vector<8x16xf32>, vector<16x128xf32>, vector<8x128xf32> -> vector<8x128xf32>
    %c0_5 = arith.constant 0 : index
    %c0_6 = arith.constant 0 : index
    %13 = vector.load %arg2[%c0_5, %c0_6] : memref<8x16xf32, #tpu.memory_space<vmem>>, vector<8x16xf32>
    %c0_7 = arith.constant 0 : index
    %c0_8 = arith.constant 0 : index
    %14 = vector.load %arg5[%c0_7, %c0_8] : memref<16x128xf32, #tpu.memory_space<vmem>>, vector<16x128xf32>
    %cst_9 = arith.constant dense<0.000000e+00> : vector<8x128xf32>
    %15 = tpu.matmul %13, %14, %cst_9 {dimension_numbers = #tpu.dot_dimension_numbers<[1], [0], [0], [1], [0, 0, 1, 1], [], []>} : vector<8x16xf32>, vector<16x128xf32>, vector<8x128xf32> -> vector<8x128xf32>
    %16 = arith.addf %12, %15 : vector<8x128xf32>
    %c0_10 = arith.constant 0 : index
    %c0_11 = arith.constant 0 : index
    %17 = vector.load %arg3[%c0_10, %c0_11] : memref<8x16xf32, #tpu.memory_space<vmem>>, vector<8x16xf32>
    %c0_12 = arith.constant 0 : index
    %c0_13 = arith.constant 0 : index
    %18 = vector.load %arg6[%c0_12, %c0_13] : memref<16x128xf32, #tpu.memory_space<vmem>>, vector<16x128xf32>
    %cst_14 = arith.constant dense<0.000000e+00> : vector<8x128xf32>
    %19 = tpu.matmul %17, %18, %cst_14 {dimension_numbers = #tpu.dot_dimension_numbers<[1], [0], [0], [1], [0, 0, 1, 1], [], []>} : vector<8x16xf32>, vector<16x128xf32>, vector<8x128xf32> -> vector<8x128xf32>
    %20 = arith.addf %16, %19 : vector<8x128xf32>
    %c0_15 = arith.constant 0 : index
    %c0_16 = arith.constant 0 : index
    %21 = vector.load %arg7[%c0_15, %c0_16] : memref<8x128xf32, #tpu.memory_space<vmem>>, vector<8x128xf32>
    tpu.vector_store %arg7[%c0_15, %c0_16], %20 {strides = array<i32>} : memref<8x128xf32, #tpu.memory_space<vmem>>, vector<8x128xf32>,
    return
  }
  func.func @transform_0(%arg0: i32) -> (i32, i32) {
    %c0_i32 = arith.constant 0 : i32
    %c0_i32_0 = arith.constant 0 : i32
    return %arg0, %c0_i32 : i32, i32
  }
  func.func @transform_1(%arg0: i32) -> (i32, i32) {
    %c0_i32 = arith.constant 0 : i32
    %c0_i32_0 = arith.constant 0 : i32
    return %arg0, %c0_i32 : i32, i32
  }
  func.func @transform_2(%arg0: i32) -> (i32, i32) {
    %c0_i32 = arith.constant 0 : i32
    %c0_i32_0 = arith.constant 0 : i32
    return %arg0, %c0_i32 : i32, i32
  }
  func.func @transform_3(%arg0: i32) -> (i32, i32) {
    %c0_i32 = arith.constant 0 : i32
    %c0_i32_0 = arith.constant 0 : i32
    %c0_i32_1 = arith.constant 0 : i32
    return %c0_i32, %c0_i32_0 : i32, i32
  }
  func.func @transform_4(%arg0: i32) -> (i32, i32) {
    %c0_i32 = arith.constant 0 : i32
    %c0_i32_0 = arith.constant 0 : i32
    %c0_i32_1 = arith.constant 0 : i32
    return %c0_i32, %c0_i32_0 : i32, i32
  }
  func.func @transform_5(%arg0: i32) -> (i32, i32) {
    %c0_i32 = arith.constant 0 : i32
    %c0_i32_0 = arith.constant 0 : i32
    %c0_i32_1 = arith.constant 0 : i32
    return %c0_i32, %c0_i32_0 : i32, i32
  }
  func.func @transform_6(%arg0: i32) -> (i32, i32) {
    %c0_i32 = arith.constant 0 : i32
    %c0_i32_0 = arith.constant 0 : i32
    return %arg0, %c0_i32 : i32, i32
  }
}

</mosaic_0001>

<bundles_post_ra>
// kernel: _cost_matrix_device.1
= control target key start
LH: loop header
LB: loop body
LE: loop exit
PB: predicated region body
PF: predicated region fallthrough
CT: control target
= control target key end

     0   :  { %11 = vsyncpa [#allocation3], 0  ;;  %s934_s0 = inlined_call_operand.vmem [shape: f32[16,16], index: 0, kind: input, shape index: {}]   ;;  %s935_s1 = inlined_call_operand.vmem [shape: f32[16,16], index: 1, kind: input, shape index: {}]   ;;  %s936_s2 = inlined_call_operand.vmem [shape: f32[16,16], index: 2, kind: input, shape index: {}]   ;;  %s937_s3 = inlined_call_operand.vmem [shape: f32[16,128], index: 3, kind: input, shape index: {}]   ;;  %s938_s4 = inlined_call_operand.vmem [shape: f32[16,128], index: 4, kind: input, shape index: {}]   ;;  %s939_s5 = inlined_call_operand.vmem [shape: f32[16,128], index: 5, kind: input, shape index: {}]   ;;  %s940_s6 = inlined_call_operand.hbm [shape: f32[16,128], index: 6, kind: output, shape index: {}]  }
   0x1   :  { %13 = vsyncpa [#allocation3 + $0x1], 0  ;;  %s810_s21 = smov 0   ;;  %s812_s22 = smov 0  }
   0x2   :  { %s814_s23 = smov 0   ;;  %s816_s24 = smov 0  }
   0x3 LB: > { %s831_s25 = sadd.s32 4294967295, %s770_s24   ;;  %s620_s26 = sadd.s32 4294967294, %s770_s24   ;;  %s770_s24 = sphi %s816_s24, %s946_s24   ;;  %s766_s23 = sphi %s814_s23, %s945_s23   ;;  %s762_s22 = sphi %s812_s22, %s944_s22   ;;  %s758_s21 = sphi %s810_s21, %s943_s21  }
   0x4   : > { %s835_s27 = sadd.s32 1, %s770_s24   ;;  %s167_s28 = sadd.s32 1, %s766_s23 }
   0x5   : > { %s164_s29 = ssub.s32 %s770_s24, %s835_s27  ;;  %p177_p0 = scmp.ne.s32.totalorder %s766_s23, %s762_s22 }
   0x6   : > { %p165_p1 = scmp.eq.s32.totalorder %s164_s29, 0  ;;  %p178_p2 = scmp.eq.s32.totalorder %s831_s25, 1 }
   0x7   : > { %p183_p3 = scmp.ne.s32.totalorder %s762_s22, %s758_s21  ;;  %p184_p4 = scmp.eq.s32.totalorder %s620_s26, 1 }
   0x8   : > { %s846_s30 = scalar_select %p165_p1, %s766_s23, %s167_s28  }
   0x9   : > { %p848_p5 = por %p178_p2, %p177_p0  ;;  %p852_p6 = por %p184_p4, %p183_p3 }
   0xa   : > { %p623_p7 = scmp.ge.s32.totalorder %s770_s24, 1  ;;  %p232_p8 = scmp.lt.s32.totalorder %s770_s24, 3 }
   0xc   : > { %p233_p9 = pnand %p623_p7, %p232_p8 }
   0xd   : > { %p269_p10 = scmp.lt.s32.totalorder (!%p233_p9), %s831_s25, 1  ;;  %s632_s20 = sshll.u32 (!%p233_p9), %s831_s25, 7 }
   0xe   : > { %236 = sbr.rel (%p233_p9) target bundleno = 546 (0x222), region = 44 }
  0x13   : > { %s270_s9 = scalar_select %p269_p10, %s831_s25, 1  ;;  %vm282_vm0 = vcmask 130048   ;;  %v298_v7 = vld [vmem:[%s938_s4 + $0x8] sm:$0xff]  ;;  %v772_v9 = vmov 0.0   ;;  %v297_v10 = vld [vmem:[%s938_s4] sm:$0xff]  ;;  %vm773_vm1 = vmmov 0  }
  0x14   : > { %v295_v8 = vld [vmem:[%s937_s3 + $0x8] sm:$0xff]  ;;  %644 = vmatprep.subr.mxu0 %v772_v9  ;;  %648 = vmatprep.mubr.msk.f32.mxu0 %vm773_vm1, %v772_v9  ;;  %v294_v13 = vld [vmem:[%s937_s3] sm:$0xff] }
  0x15   : > { %s860_s10 = sshll.u32 %s270_s9, 3  ;;  %645 = vmatpush3.msra.mxu0 %v298_v7  ;;  %651 = vmatprep.subr.mxu1 %v772_v9  ;;  %v447_v12 = vld [vmem:[%s939_s5 + $0x8] sm:$0xff]  ;;  %v446_v14 = vld [vmem:[%s939_s5] sm:$0xff]  ;;  %s535_s9 = scalar_lea.hbm %s940_s6, %s632_s20 }
  0x16   : > { %s272_s13 = scalar_lea.vmem %s934_s0, %s860_s10  ;;  %s276_s18 = scalar_lea.vmem %s935_s1, %s860_s10  ;;  %646 = vmatprep.subr.mxu0 %v772_v9  ;;  %652 = vmatpush3.msra.mxu1 %v295_v8 }
  0x17   : > { %v281_v0 = vld [vmem:[%s272_s13] sm:$0xff]  ;;  %647 = vmatpush3.msra.mxu0 %v297_v10  ;;  %653 = vmatprep.subr.mxu1 %v772_v9  ;;  %s280_s17 = scalar_lea.vmem %s936_s2, %s860_s10  ;;  %s774_s13 = smov [#allocation2]  }
  0x18   : > { %v283_v1 = vsel %vm282_vm0, %v281_v0, -inf  ;;  %v296_v11 = vld [vmem:[%s276_s18] sm:$0xff]  ;;  %658 = vmatprep.subr.mxu0 %v772_v9  ;;  %654 = vmatpush3.msra.mxu1 %v294_v13  ;;  %s266_s18 = sand.u32 1, %s762_s22   ;;  %s714_s14 = sshll.u32 %s774_s13, 4  ;;  %s715_s14 = int_to_ptr.vmem [resolvable:$false] %s714_s14 }
  0x19   : > { %284 = vmax.xlane.f32.xlu0 %v283_v1  ;;  %649 = vmatmul.mubr.msk.f32.vlgmr.msra.gmra.mxu0 %vm282_vm0, %v296_v11  ;;  %v445_v15 = vld [vmem:[%s280_s17] sm:$0xff]  ;;  %s624_s19 = sshll.u32 %s266_s18, 3  ;;  %s524_s11 = scalar_lea.sflag [#allocation3], %s266_s18 }
  0x1a   : > { %659 = vmatpush3.msra.mxu0 %v447_v12  ;;  %655 = vmatprep.mubr.msk.f32.mxu1 %vm773_vm1, %v772_v9  ;;  %s268_s26 = scalar_lea.vmem [#allocation2], %s624_s19  ;;  %s716_s25 = scalar_lea.vmem %s715_s14, 256 }
  0x1b   : > { %660 = vmatprep.subr.mxu0 %v772_v9  ;;  %662 = vmatprep.mubr.msk.f32.mxu0 %vm773_vm1, %v772_v9  ;;  %s537_s10 = sshll.u32 %s268_s26, 4  ;;  %s538_s10 = int_to_ptr.vmem [resolvable:$true] %s537_s10 }
  0x1c   : > { %661 = vmatpush3.msra.mxu0 %v446_v14  ;;  %s710_s12 = scalar_lea.vmem %s538_s10, 128  ;;  %p717_p0 = scmp.lt.s32.totalorder %s538_s10, %s715_s14 }
  0x1d   : > { %663 = vmatmul.mubr.msk.f32.vlgmr.msra.gmra.mxu0 %vm282_vm0, %v445_v15  ;;  %p711_p11 = scmp.ne.s32.totalorder %s538_s10, %s710_s12  ;;  %p718_p1 = scmp.lt.s32.totalorder %s716_s25, %s710_s12 }
  0x1f   : > { %p712_p12 = pnand %p711_p11, %p848_p5  ;;  %p719_p2 = por %p718_p1, %p717_p0 }
  0x21   : > { %p713_p13 = pneg %p712_p12 }
  0x23   : > { %p720_p3 = pnand %p719_p2, %p713_p13 }
  0xa2   : > { %v285_v2 = vpop.xlane.xlu0 %284 }
  0xa3   : > { %v286_v3 = vsub.f32 %v281_v0, %v285_v2 }
  0xa5   : > { %v287_v4 = vmul.f32 1.442695, %v286_v3 }
  0xa7   : > { %706 = vpow2.f32 %v287_v4 }
  0xb4   : > { %v707_v5 = vpop.eup %706 }
  0xb5   : > { %v289_v6 = vsel %vm282_vm0, %v707_v5, 0.0 }
  0xb6   : > { %290 = vadd.xlane.f32.xlu0 %v289_v6 }
  0xd9   : > { %v368_v19 = vpop.f32.mrf.mxu0 }
  0xdb   : > { %v650_v20 = vpop.f32.mrf.mxu0 }
  0xdd   : > { %v517_v21 = vpop.f32.mrf.mxu0 }
  0xdf   : > { %v664_v22 = vpop.f32.mrf.mxu0 }
 0x13f   : > { %v291_v16 = vpop.xlane.xlu0 %290 }
 0x140   : > { %708 = vrcp.f32 %v291_v16 }
 0x14d   : > { %v709_v17 = vpop.eup %708 }
 0x14e   : > { %v293_v18 = vmul.f32 %v709_v17, %v707_v5 }
 0x150   : > { %656 = vmatmul.mubr.msk.f32.vlgmr.msra.gmra.mxu1 %vm282_vm0, %v293_v18 }
 0x210   : > { %v441_v23 = vpop.f32.mrf.mxu1 }
 0x211   : > { %v442_v24 = vadd.f32 %v441_v23, %v368_v19 }
 0x212   : > { %v657_v25 = vpop.f32.mrf.mxu1 }
 0x213   : > { %v521_v26 = vadd.f32 %v517_v21, %v442_v24 }
 0x215   : > { %522 = vst [vmem:[%s268_s26] sm:$0xff] %v521_v26 }
 0x216   : > { %723 = shalt.err (!%p720_p3)
}
 0x217   : > { %s724_s15 = scalar_lea.hbm %s535_s9, 128  ;;  %s728_s18 = scalar_lea.hbm %s940_s6, 256 }
 0x218   : > { %p725_p4 = scmp.ne.s32.totalorder %s535_s9, %s724_s15  ;;  %p729_p9 = scmp.lt.s32.totalorder %s535_s9, %s940_s6 }
 0x219   : > { %p730_p10 = scmp.lt.s32.totalorder %s728_s18, %s724_s15 }
 0x21a   : > { %p726_p7 = pnand %p725_p4, %p848_p5 }
 0x21b   : > { %p731_p11 = por %p730_p10, %p729_p9 }
 0x21c   : > { %p727_p8 = pneg %p726_p7 }
 0x21e   : > { %p732_p12 = pnand %p731_p11, %p727_p8 }
 0x220   : > { %735 = shalt.err (!%p732_p12)
}
 0x221   : > { %665 = dma.vmem_to_hbm [thread:$0]  (%p848_p5), %s538_s10, 128, %s535_s9, %s524_s11  }
 0x222 PF: > { %p671_p13 = scmp.ge.s32.totalorder %s770_s24, 2  ;;  %s549_s26 = sand.u32 1, %s758_s21  }
 0x223   : > { %s550_s28 = scalar_lea.sflag [#allocation3], %s549_s26 }
 0x224   : > { %p668_p0 = pnand %p671_p13, %p852_p6 }
 0x226   : > { %p669_p1 = pneg %p668_p0 }
 0x228   : > { %753 = dma.done.wait (%p669_p1), %s550_s28, 128  }
 0x229   : > { %755 = vsyncadd (%p669_p1), %s550_s28, 4294967168  ;;  %p16_p2 = scmp.ge.s32.totalorder %s835_s27, 4   ;;  %s943_s21 = smov %s762_s22 }
 0x22a   : > { %s944_s22 = smov %s766_s23  ;;  %s945_s23 = smov %s846_s30 }
 0x22b   : > { %s946_s24 = smov %s835_s27  ;;  %18 = sbr.rel (!%p16_p2) target bundleno = 3 (0x3), region = 85 }
 0x230   :  { %555 = vsyncpa [#allocation3], 1 }
 0x231   :  { %557 = vsyncpa [#allocation3 + $0x1], 1 }

</bundles_post_ra>
